<compile_context>
chip_gen: v7x
topology: tpu7x:2x2x1
jax: 0.10.0
libtpu: 0.0.40
codegen_flags: <defaults>
</compile_context>

<pallas_src>
import functools

import jax
import jax.numpy as jnp
from jax.experimental import pallas as pl
from jax.experimental.pallas import tpu as pltpu


def _rmsnorm_kernel(x_ref, w_ref, o_ref, *, eps, inv_d):
    # x_ref: (tile_rows, d_model) in VMEM (f32 or bf16)
    # w_ref: (1, d_model) f32 in VMEM (resident, same block every step)
    # o_ref: (tile_rows, d_model) in VMEM (same dtype as x)
    xf = x_ref[...].astype(jnp.float32)
    ss = jnp.sum(xf * xf, axis=-1, keepdims=True)          # f32 accumulation
    inv = jax.lax.rsqrt(ss * inv_d + eps)                   # EUP rsqrt; 1/d + eps folded in
    # Re-read + re-cast x so the full-tile f32 upcast is not kept live across
    # the reduction (halves peak f32 temp for bf16 tiles -> bigger tiles fit).
    o_ref[...] = (x_ref[...].astype(jnp.float32) * inv * w_ref[...]).astype(o_ref.dtype)


def _vmem_capacity_bytes():
    try:
        return int(pltpu.get_tpu_info().vmem_capacity_bytes)
    except Exception:
        return 64 * 1024 * 1024  # conservative (v7x-sized) fallback


def _pick_tile_rows(rows, d_model, dtype_bytes, vmem_bytes):
    # Budget each block as if it were f32: this automatically leaves room for
    # the bf16 -> f32 upcast temporaries inside the kernel body.
    row_bytes_f32 = d_model * 4
    # Packed sublane tile for the I/O dtype: 8 (f32), 16 (bf16), 32 (int8/fp8).
    sub = max(8, 32 // max(1, dtype_bytes))
    rows_aligned = pl.cdiv(rows, sub) * sub

    # Per-block budget: 4 double-buffered pipeline blocks (2 in + 2 out) share
    # ~1/4 of physical VMEM; byte-target cap at 8 MiB (flat part of the
    # measured HBM-roofline-vs-tile-size curve).
    per_block_budget = vmem_bytes // 4 // 4
    per_block_budget = min(per_block_budget, 8 << 20)
    per_block_budget = max(per_block_budget, sub * row_bytes_f32)
    tile_rows = max(sub, (per_block_budget // row_bytes_f32) // sub * sub)

    # For large inputs keep >= 4 blocks (>=2 for mid-sized) so the "parallel"
    # row axis can be sharded across both TensorCores on v7x.
    total_f32 = rows_aligned * row_bytes_f32
    if total_f32 >= (32 << 20):
        min_blocks = 4
    elif total_f32 >= (8 << 20):
        min_blocks = 2
    else:
        min_blocks = 1
    if min_blocks > 1 and rows_aligned >= min_blocks * sub:
        max_tile = max(sub, (rows_aligned // min_blocks) // sub * sub)
        tile_rows = min(tile_rows, max_tile)

    return min(tile_rows, rows_aligned)


def rmsnorm(x, weight, eps=1e-5, tile_rows=None):
    """x: (..., d_model) f32/bf16; weight: (d_model,). Matches torch RMSNorm."""
    orig_shape = x.shape
    d_model = orig_shape[-1]
    rows = 1
    for s in orig_shape[:-1]:
        rows *= s
    x2d = x.reshape(rows, d_model)
    w2d = weight.astype(jnp.float32).reshape(1, d_model)

    dtype_bytes = jnp.dtype(x.dtype).itemsize
    vmem_bytes = _vmem_capacity_bytes()
    if tile_rows is None:
        tile_rows = _pick_tile_rows(rows, d_model, dtype_bytes, vmem_bytes)

    # No host-side padding: Pallas masks the partial final block.
    num_blocks = pl.cdiv(rows, tile_rows)

    # Scoped VMEM: 4 double-buffered I/O blocks + 2x f32 upcast scratch inside
    # the body + weight + headroom.  Floor of 32 MiB (v5e scoped default is
    # only 16 MiB), capped at 90% of this generation's physical VMEM.
    block_bytes = tile_rows * d_model * dtype_bytes
    f32_tile_bytes = tile_rows * d_model * 4
    needed = 4 * block_bytes + 2 * f32_tile_bytes + 2 * d_model * 4 + (4 << 20)
    vmem_limit = min(max(needed, 32 << 20), int(vmem_bytes * 0.9))

    kernel = functools.partial(_rmsnorm_kernel, eps=eps, inv_d=1.0 / d_model)

    out = pl.pallas_call(
        kernel,
        out_shape=jax.ShapeDtypeStruct((rows, d_model), x.dtype),
        grid_spec=pltpu.PrefetchScalarGridSpec(
            num_scalar_prefetch=0,
            grid=(num_blocks,),
            in_specs=[
                pl.BlockSpec((tile_rows, d_model), lambda i: (i, 0)),
                pl.BlockSpec((1, d_model), lambda i: (0, 0)),
            ],
            out_specs=pl.BlockSpec((tile_rows, d_model), lambda i: (i, 0)),
        ),
        compiler_params=pltpu.CompilerParams(
            dimension_semantics=("parallel",),   # shards the row grid across TCs on v7x
            vmem_limit_bytes=vmem_limit,
        ),
    )(x2d, w2d)

    return out.reshape(orig_shape)


def _reference(x, weight, eps):
    xf = x.astype(jnp.float32)
    inv = jax.lax.rsqrt(jnp.mean(xf * xf, axis=-1, keepdims=True) + eps)
    return (xf * inv * weight.astype(jnp.float32)).astype(x.dtype)


if __name__ == "__main__":
    eps = 1e-5

    # Case 1: f32, shapes matching the module's typical (batch, seq, d_model).
    batch, seq, d_model = 2, 8, 32
    x = jax.random.normal(jax.random.PRNGKey(0), (batch, seq, d_model), dtype=jnp.float32)
    weight = jnp.ones((d_model,), dtype=jnp.float32)  # nn.Parameter(torch.ones(d_model))
    out = jax.block_until_ready(rmsnorm(x, weight, eps=eps))
    ref = _reference(x, weight, eps)
    assert jnp.allclose(out, ref, atol=1e-5, rtol=1e-5), "f32 mismatch vs reference"

    # Case 2: bf16 I/O, non-divisible row count -> partial final block,
    # no host-side pad/slice; f32 stats inside the kernel.
    x_bf = jax.random.normal(jax.random.PRNGKey(1), (3, 5, d_model),
                             dtype=jnp.float32).astype(jnp.bfloat16)
    out_bf = jax.block_until_ready(rmsnorm(x_bf, weight, eps=eps))
    ref_bf = _reference(x_bf, weight, eps)
    assert out_bf.dtype == jnp.bfloat16
    assert jnp.allclose(out_bf.astype(jnp.float32), ref_bf.astype(jnp.float32),
                        atol=2e-2, rtol=2e-2), "bf16 mismatch vs reference"

    # Case 3: lane-dense d_model (128-multiple), bf16, multi-block grid with a
    # partial final block (40 rows, tile_rows=16 -> 3 blocks).
    d2 = 256
    x3 = jax.random.normal(jax.random.PRNGKey(2), (2, 20, d2),
                           dtype=jnp.float32).astype(jnp.bfloat16)
    w3 = 1.0 + 0.1 * jax.random.normal(jax.random.PRNGKey(3), (d2,), dtype=jnp.float32)
    out3 = jax.block_until_ready(rmsnorm(x3, w3, eps=eps, tile_rows=16))
    ref3 = _reference(x3, w3, eps)
    assert out3.dtype == jnp.bfloat16
    assert jnp.allclose(out3.astype(jnp.float32), ref3.astype(jnp.float32),
                        atol=2e-2, rtol=2e-2), "lane-dense bf16 mismatch vs reference"

    print("KERNEL_OK")
</pallas_src>

<mosaic_0001>
module attributes {stable_mosaic.version = 11 : i64} {
  func.func @_rmsnorm_kernel(%arg0: i32, %arg1: memref<16x32xf32, #tpu.memory_space<vmem>>, %arg2: memref<1x32xf32, #tpu.memory_space<vmem>>, %arg3: memref<16x32xf32, #tpu.memory_space<vmem>>) attributes {dimension_semantics = [#tpu.dimension_semantics<parallel>], iteration_bounds = array<i64: 1>, scalar_prefetch = 0 : i64, scratch_operands = 0 : i64, tpu.core_type = #tpu.core_type<tc>, window_params = [{transform_indices = @transform_0, window_bounds = array<i64: 16, 32>}, {pipeline_mode = #tpu.pipeline_mode<synchronous>, transform_indices = @transform_1, window_bounds = array<i64: 1, 32>}, {transform_indices = @transform_2, window_bounds = array<i64: 16, 32>}]} {
    %c0 = arith.constant 0 : index
    %c0_0 = arith.constant 0 : index
    %0 = vector.load %arg1[%c0, %c0_0] : memref<16x32xf32, #tpu.memory_space<vmem>>, vector<16x32xf32>
    %1 = arith.mulf %0, %0 : vector<16x32xf32>
    %cst = arith.constant dense<0.000000e+00> : vector<16xf32>
    %2 = vector.multi_reduction <add>, %1, %cst [1] : vector<16x32xf32> to vector<16xf32>
    %3 = vector.shape_cast %2 : vector<16xf32> to vector<16x1xf32>
    %cst_1 = arith.constant 3.125000e-02 : f32
    %4 = vector.broadcast %cst_1 : f32 to vector<16x1xf32>
    %5 = arith.mulf %3, %4 : vector<16x1xf32>
    %cst_2 = arith.constant 9.99999974E-6 : f32
    %6 = vector.broadcast %cst_2 : f32 to vector<16x1xf32>
    %7 = arith.addf %5, %6 : vector<16x1xf32>
    %8 = math.rsqrt %7 : vector<16x1xf32>
    %c0_3 = arith.constant 0 : index
    %c0_4 = arith.constant 0 : index
    %9 = vector.load %arg1[%c0_3, %c0_4] : memref<16x32xf32, #tpu.memory_space<vmem>>, vector<16x32xf32>
    %10 = vector.broadcast %8 : vector<16x1xf32> to vector<16x32xf32>
    %11 = arith.mulf %9, %10 : vector<16x32xf32>
    %c0_5 = arith.constant 0 : index
    %c0_6 = arith.constant 0 : index
    %12 = vector.load %arg2[%c0_5, %c0_6] : memref<1x32xf32, #tpu.memory_space<vmem>>, vector<1x32xf32>
    %13 = vector.broadcast %12 : vector<1x32xf32> to vector<16x32xf32>
    %14 = arith.mulf %11, %13 : vector<16x32xf32>
    %c0_7 = arith.constant 0 : index
    %c0_8 = arith.constant 0 : index
    %15 = vector.load %arg3[%c0_7, %c0_8] : memref<16x32xf32, #tpu.memory_space<vmem>>, vector<16x32xf32>
    tpu.vector_store %arg3[%c0_7, %c0_8], %14 {strides = array<i32>} : memref<16x32xf32, #tpu.memory_space<vmem>>, vector<16x32xf32>,
    return
  }
  func.func @transform_0(%arg0: i32) -> (i32, i32) {
    %c0_i32 = arith.constant 0 : i32
    %c0_i32_0 = arith.constant 0 : i32
    return %arg0, %c0_i32 : i32, i32
  }
  func.func @transform_1(%arg0: i32) -> (i32, i32) {
    %c0_i32 = arith.constant 0 : i32
    %c0_i32_0 = arith.constant 0 : i32
    %c0_i32_1 = arith.constant 0 : i32
    return %c0_i32, %c0_i32_0 : i32, i32
  }
  func.func @transform_2(%arg0: i32) -> (i32, i32) {
    %c0_i32 = arith.constant 0 : i32
    %c0_i32_0 = arith.constant 0 : i32
    return %arg0, %c0_i32 : i32, i32
  }
}

</mosaic_0001>

<bundles_post_ra>
// kernel: tpu_custom_call.1
= control target key start
LH: loop header
LB: loop body
LE: loop exit
PB: predicated region body
PF: predicated region fallthrough
CT: control target
= control target key end

     0   :  { %7 = vsyncpa [#allocation3], 0  ;;  %s186_s0 = inlined_call_operand.hbm [shape: f32[16,32], index: 0, kind: input, shape index: {}]   ;;  %s187_s1 = inlined_call_operand.vmem [shape: f32[1,32], index: 1, kind: input, shape index: {}]   ;;  %s188_s2 = inlined_call_operand.hbm [shape: f32[16,32], index: 2, kind: output, shape index: {}]  }
   0x1   :  { %8 = vsyncpa [#allocation4], 0  ;;  %s130_s9 = smov [#allocation2]   ;;  %s82_s13 = scalar_lea.hbm %s186_s0, 256 }
   0x2   :  { %s14_s10 = sshll.u32 %s130_s9, 4  ;;  %p83_p0 = scmp.ne.s32.totalorder %s186_s0, %s82_s13  ;;  %s15_s10 = int_to_ptr.vmem [resolvable:$true] %s14_s10 }
   0x3   :  { %p86_p1 = scmp.lt.u32.totalorder %s82_s13, %s186_s0 }
   0x5   :  { %p88_p2 = pnand %p86_p1, %p83_p0 }
   0x7   :  { %91 = shalt.err (!%p88_p2)
}
   0x8   :  { %s92_s18 = scalar_lea.vmem %s15_s10, 256  ;;  %p97_p4 = scmp.lt.s32.totalorder %s15_s10, %s15_s10 }
   0x9   :  { %p93_p3 = scmp.ne.s32.totalorder %s15_s10, %s92_s18  ;;  %p98_p5 = scmp.lt.s32.totalorder %s92_s18, %s92_s18 }
   0xb   :  { %p99_p6 = por %p98_p5, %p97_p4 }
   0xd   :  { %p100_p7 = pnand %p99_p6, %p93_p3 }
   0xf   :  { %103 = shalt.err (!%p100_p7)
}
  0x10   :  { %s131_s19 = smov 128   ;;  %s132_s20 = smov 8  }
  0x11   :  { %20 = dma.hbm_to_vmem [thread:$0]  %s186_s0, 256, %s15_s10, [#allocation3], %s131_s19, %s131_s19, %s132_s20  }
  0x12   :  { %126 = dma.done.wait [#allocation3], 256  }
  0x13   :  { %127 = vsyncadd [#allocation3], 4294967040  ;;  %v26_v0 = vld [vmem:[#allocation2] sm:$0xff]  ;;  %vm30_vm0 = vcmask 261120   ;;  %v27_v1 = vld [vmem:[#allocation2 + $0x8] sm:$0xff]  ;;  %s133_s24 = smov [#allocation5]  }
  0x14   :  { %v28_v2 = vmul.f32 %v26_v0, %v26_v0  ;;  %v29_v3 = vmul.f32 %v27_v1, %v27_v1  ;;  %v73_v13 = vld [vmem:[%s187_s1] ss:$0 sm:$0xff]  ;;  %s61_s25 = sshll.u32 %s133_s24, 4  ;;  %s62_s25 = int_to_ptr.vmem [resolvable:$true] %s61_s25 }
  0x15   :  { %s104_s26 = scalar_lea.vmem %s62_s25, 256  ;;  %p109_p9 = scmp.lt.s32.totalorder %s62_s25, %s62_s25 }
  0x16   :  { %v31_v4 = vsel %vm30_vm0, %v28_v2, 0.0  ;;  %v34_v5 = vsel %vm30_vm0, %v29_v3, 0.0  ;;  %p105_p8 = scmp.ne.s32.totalorder %s62_s25, %s104_s26  ;;  %p110_p10 = scmp.lt.s32.totalorder %s104_s26, %s104_s26 }
  0x17   :  { %32 = vadd.xlane.f32.xlu0 %v31_v4 }
  0x18   :  { %p111_p11 = por %p110_p10, %p109_p9 }
  0x1a   :  { %p112_p12 = pnand %p111_p11, %p105_p8 }
  0x1b   :  { %35 = vadd.xlane.f32.xlu0 %v34_v5 }
  0xa4   :  { %v33_v6 = vpop.xlane.xlu0 %32 }
  0xa5   :  { %v37_v7 = vmul.f32 0.03125, %v33_v6 }
  0xa7   :  { %v39_v8 = vadd.f32 1e-05, %v37_v7 }
  0xa8   :  { %v36_v9 = vpop.xlane.xlu0 %35 }
  0xa9   :  { %78 = vrsqrt.f32 %v39_v8  ;;  %v38_v10 = vmul.f32 0.03125, %v36_v9 }
  0xab   :  { %v40_v11 = vadd.f32 1e-05, %v38_v10 }
  0xad   :  { %80 = vrsqrt.f32 %v40_v11 }
  0xb3   :  { %v79_v12 = vpop.eup %78 }
  0xb4   :  { %v43_v14 = vmul.f32 %v79_v12, %v26_v0 }
  0xb6   :  { %v52_v15 = vmul.f32 %v73_v13, %v43_v14 }
  0xb7   :  { %v81_v16 = vpop.eup %80 }
  0xb8   :  { %v44_v17 = vmul.f32 %v81_v16, %v27_v1  ;;  %54 = vst.msk [vmem:[#allocation5] sm:$0xff] %vm30_vm0, %v52_v15 }
  0xba   :  { %v53_v18 = vmul.f32 %v73_v13, %v44_v17 }
  0xbc   :  { %55 = vst.msk [vmem:[#allocation5 + $0x8] sm:$0xff] %vm30_vm0, %v53_v18 }
  0xbd   :  { %115 = shalt.err (!%p112_p12)
}
  0xbe   :  { %s116_s28 = scalar_lea.hbm %s188_s2, 256 }
  0xbf   :  { %p117_p13 = scmp.ne.s32.totalorder %s188_s2, %s116_s28  ;;  %p120_p0 = scmp.lt.u32.totalorder %s116_s28, %s188_s2 }
  0xc1   :  { %p122_p1 = pnand %p120_p0, %p117_p13 }
  0xc3   :  { %125 = shalt.err (!%p122_p1)
}
  0xc4   :  { %67 = dma.vmem_to_hbm [thread:$0]  %s62_s25, 256, %s188_s2, [#allocation4], %s131_s19, %s131_s19, %s132_s20  }
  0xc5   :  { %128 = dma.done.wait [#allocation4], 256  }
  0xc6   :  { %129 = vsyncadd [#allocation4], 4294967040 }
  0xc7   :  { %71 = vsyncpa [#allocation3], 1 }
  0xc8   :  { %72 = vsyncpa [#allocation4], 1 }

</bundles_post_ra>
